<compile_context>
chip_gen: v7x
topology: tpu7x:2x2x1
jax: 0.10.0
libtpu: 0.0.40
codegen_flags: <defaults>
</compile_context>

<pallas_src>
import math
import functools

import jax
import jax.numpy as jnp
from jax import lax
from jax.experimental import pallas as pl
from jax.experimental.pallas import tpu as pltpu


def _t5_relpos_bias_kernel(emb_ref, out_ref, *, scale, causal, num_buckets,
                           max_distance):
    """out_ref[r, c] = emb[bucket((row0 + r) - (col0 + c))] * scale.

    emb_ref : SMEM, (num_buckets,) float32 -- flattened Embedding weight.
    out_ref : VMEM, (tile_i, tile_j) float32 -- one tile of the bias matrix.
    """
    TI, TJ = out_ref.shape
    row0 = pl.program_id(0) * TI          # global query-position offset
    col0 = pl.program_id(1) * TJ          # global key-position offset
    scale_f = jnp.float32(scale)

    # Bucketization constants, folded at trace time (no runtime divides).
    nb = num_buckets if causal else num_buckets // 2
    max_exact = nb // 2
    inv_max_exact = 1.0 / max_exact
    log_scale = (nb - max_exact) / math.log(max_distance / max_exact)

    def write_const(idx):
        # idx is a trace-time Python int; emb_ref[idx]*scale is a scalar-unit op.
        out_ref[...] = jnp.full((TI, TJ), emb_ref[idx] * scale_f, jnp.float32)

    def compute_tile():
        # n = q - k   (the module's  n = -(k_pos - q_pos))
        q = row0 + lax.broadcasted_iota(jnp.int32, (TI, TJ), 0)
        k = col0 + lax.broadcasted_iota(jnp.int32, (TI, TJ), 1)
        n = q - k

        if not causal:
            mirror = jnp.where(n < 0, nb, 0).astype(jnp.int32)
            n_ = jnp.abs(n)
        else:
            mirror = None
            n_ = jnp.maximum(n, 0)

        is_small = n_ < max_exact
        # Clamp before the log so the "large" branch never sees log(0); the
        # clamp is masked out by `is_small` anyway (matches torch semantics).
        n_safe = jnp.maximum(n_, max_exact).astype(jnp.float32)
        val_if_large = max_exact + (
            jnp.log(n_safe * jnp.float32(inv_max_exact)) * jnp.float32(log_scale)
        ).astype(jnp.int32)            # trunc-toward-zero == torch .long() for >= 0
        val_if_large = jnp.minimum(val_if_large, nb - 1)

        bucket = jnp.where(is_small, n_, val_if_large)
        if mirror is not None:
            bucket = bucket + mirror   # int32 in [0, num_buckets)

        # Embedding "gather": running select chain over the tiny bucket table.
        # scale is folded into each per-bucket scalar (scalar-unit multiply).
        bias = jnp.full((TI, TJ), emb_ref[0] * scale_f, jnp.float32)
        for b in range(1, num_buckets):
            bias = jnp.where(bucket == b, emb_ref[b] * scale_f, bias)
        out_ref[...] = bias

    if causal:
        # Tile entirely with k >= q: n = max(q - k, 0) == 0 -> bucket 0.
        c_zero = col0 >= row0 + (TI - 1)
        # Tile entirely with q - k >= max_distance: bucket saturates at nb - 1.
        c_far = row0 >= col0 + (TJ - 1) + max_distance
        any_const = jnp.logical_or(c_zero, c_far)

        @pl.when(c_zero)
        def _():
            write_const(0)

        @pl.when(c_far)
        def _():
            write_const(num_buckets - 1)

        @pl.when(jnp.logical_not(any_const))
        def _():
            compute_tile()
    else:
        # Tile entirely with q - k >= max_distance: bucket = nb - 1 (no mirror).
        c_far_lo = row0 >= col0 + (TJ - 1) + max_distance
        # Tile entirely with k - q >= max_distance: bucket = nb + nb - 1.
        c_far_hi = col0 >= row0 + (TI - 1) + max_distance
        any_const = jnp.logical_or(c_far_lo, c_far_hi)

        @pl.when(c_far_lo)
        def _():
            write_const(nb - 1)

        @pl.when(c_far_hi)
        def _():
            write_const(num_buckets - 1)

        @pl.when(jnp.logical_not(any_const))
        def _():
            compute_tile()


def t5_relative_position_bias(emb_flat, i, j, *, scale, causal=False,
                              num_buckets=32, max_distance=128,
                              tile_i=256, tile_j=512):
    """emb_flat: (num_buckets,) float32 -- nn.Embedding(num_buckets, 1) weight.

    Returns the (i, j) float32 bias matrix, identical to the PyTorch module.
    Default tile (256, 512) f32 = 0.5 MiB: lane-dense (last dim multiple of
    128 whenever j >= 512) and well inside every generation's scoped-VMEM
    default (16/32/32 MiB on v5e/v6e/v7x).  Smaller tiles make more of the
    matrix hit the constant fast paths; larger tiles amortize per-step
    overhead -- (256, 512) is a reasonable middle ground for max_distance=128.
    """
    tile_i = min(tile_i, i)
    tile_j = min(tile_j, j)
    grid = (pl.cdiv(i, tile_i), pl.cdiv(j, tile_j))

    kernel = functools.partial(
        _t5_relpos_bias_kernel,
        scale=scale, causal=causal,
        num_buckets=num_buckets, max_distance=max_distance,
    )
    return pl.pallas_call(
        kernel,
        out_shape=jax.ShapeDtypeStruct((i, j), jnp.float32),
        grid=grid,
        in_specs=[pl.BlockSpec(memory_space=pltpu.MemorySpace.SMEM)],
        out_specs=pl.BlockSpec((tile_i, tile_j), lambda bi, bj: (bi, bj)),
        compiler_params=pltpu.CompilerParams(
            dimension_semantics=("parallel", "parallel")),
    )(emb_flat)


def _reference_bias(emb_flat, i, j, *, scale, causal, num_buckets, max_distance):
    """Pure-JAX reference mirroring the PyTorch module, for verification.

    Uses the same folded constants / op ordering as the kernel so the integer
    bucket computation is bitwise identical.
    """
    q = jnp.arange(i)[:, None]
    k = jnp.arange(j)[None, :]
    n = -(k - q)
    nb = num_buckets
    if not causal:
        nb //= 2
        ret = (n < 0).astype(jnp.int32) * nb
        n = jnp.abs(n)
    else:
        ret = jnp.zeros((i, j), jnp.int32)
        n = jnp.maximum(n, 0)
    max_exact = nb // 2
    inv_max_exact = 1.0 / max_exact
    log_scale = (nb - max_exact) / math.log(max_distance / max_exact)
    is_small = n < max_exact
    n_safe = jnp.maximum(n, max_exact).astype(jnp.float32)
    vil = max_exact + (jnp.log(n_safe * jnp.float32(inv_max_exact))
                       * jnp.float32(log_scale)).astype(jnp.int32)
    vil = jnp.minimum(vil, nb - 1)
    bucket = ret + jnp.where(is_small, n, vil)
    return emb_flat[bucket] * scale


if __name__ == "__main__":
    num_buckets = 32
    max_distance = 128
    scale = 8.0 ** -0.5   # typical dim_head ** -0.5

    key = jax.random.PRNGKey(0)
    k_emb, k_x = jax.random.split(key)

    # Deterministic init of nn.Embedding(num_buckets, 1).weight, flattened.
    emb_flat = (jax.random.normal(k_emb, (num_buckets, 1), jnp.float32)
                * 0.02).reshape(num_buckets)

    # ---- case 1: module-shaped input (only x.shape[-2:] is consumed) --------
    x = jax.random.normal(k_x, (2, 4, 16, 16), jnp.float32)  # values unused
    i, j = x.shape[-2], x.shape[-1]
    bias = t5_relative_position_bias(
        emb_flat, i, j, scale=scale, causal=False,
        num_buckets=num_buckets, max_distance=max_distance)
    bias = jax.block_until_ready(bias)
    ref = _reference_bias(emb_flat, i, j, scale=scale, causal=False,
                          num_buckets=num_buckets, max_distance=max_distance)
    assert bias.shape == (i, j) and bias.dtype == jnp.float32
    assert jnp.allclose(bias, ref, atol=1e-6, rtol=1e-6)

    # ---- case 2: multi-tile causal grid (tiling + both causal const paths) --
    i2, j2 = 1024, 1024
    bias2 = t5_relative_position_bias(
        emb_flat, i2, j2, scale=scale, causal=True,
        num_buckets=num_buckets, max_distance=max_distance)
    bias2 = jax.block_until_ready(bias2)
    ref2 = _reference_bias(emb_flat, i2, j2, scale=scale, causal=True,
                           num_buckets=num_buckets, max_distance=max_distance)
    assert bias2.shape == (i2, j2) and bias2.dtype == jnp.float32
    assert jnp.allclose(bias2, ref2, atol=1e-6, rtol=1e-6)

    # ---- case 3: multi-tile non-causal grid (both saturated const paths) ----
    i3, j3 = 1024, 1024
    bias3 = t5_relative_position_bias(
        emb_flat, i3, j3, scale=scale, causal=False,
        num_buckets=num_buckets, max_distance=max_distance)
    bias3 = jax.block_until_ready(bias3)
    ref3 = _reference_bias(emb_flat, i3, j3, scale=scale, causal=False,
                           num_buckets=num_buckets, max_distance=max_distance)
    assert bias3.shape == (i3, j3) and bias3.dtype == jnp.float32
    assert jnp.allclose(bias3, ref3, atol=1e-6, rtol=1e-6)

    print("KERNEL_OK")
</pallas_src>

<mosaic_0001>
module attributes {stable_mosaic.version = 11 : i64} {
  func.func @_t5_relpos_bias_kernel(%arg0: i32, %arg1: i32, %arg2: memref<32xf32, #tpu.memory_space<smem>>, %arg3: memref<16x16xf32, #tpu.memory_space<vmem>>) attributes {dimension_semantics = [#tpu.dimension_semantics<parallel>, #tpu.dimension_semantics<parallel>], iteration_bounds = array<i64: 1, 1>, scalar_prefetch = 0 : i64, scratch_operands = 0 : i64, tpu.core_type = #tpu.core_type<tc>, window_params = [{transform_indices = @transform_0, window_bounds = array<i64: 32>}, {transform_indices = @transform_1, window_bounds = array<i64: 16, 16>}]} {
    %c16_i32 = arith.constant 16 : i32
    %0 = arith.muli %arg0, %c16_i32 : i32
    %c16_i32_0 = arith.constant 16 : i32
    %1 = arith.muli %arg1, %c16_i32_0 : i32
    %c15_i32 = arith.constant 15 : i32
    %2 = arith.addi %1, %c15_i32 : i32
    %c128_i32 = arith.constant 128 : i32
    %3 = arith.addi %2, %c128_i32 : i32
    %4 = arith.cmpi sge, %0, %3 : i32
    %c15_i32_1 = arith.constant 15 : i32
    %5 = arith.addi %0, %c15_i32_1 : i32
    %c128_i32_2 = arith.constant 128 : i32
    %6 = arith.addi %5, %c128_i32_2 : i32
    %7 = arith.cmpi sge, %1, %6 : i32
    %8 = arith.ori %4, %7 : i1
    %9 = arith.extui %4 : i1 to i32
    %cst = arith.constant 0.353553385 : f32
    %c0_i32 = arith.constant 0 : i32
    %10 = arith.cmpi ne, %9, %c0_i32 : i32
    scf.if %10 {
      %c15 = arith.constant 15 : index
      %16 = memref.load %arg2[%c15] : memref<32xf32, #tpu.memory_space<smem>>
      %17 = arith.mulf %16, %cst : f32
      %18 = vector.broadcast %17 : f32 to vector<16x16xf32>
      %c0 = arith.constant 0 : index
      %c0_7 = arith.constant 0 : index
      %19 = vector.load %arg3[%c0, %c0_7] : memref<16x16xf32, #tpu.memory_space<vmem>>, vector<16x16xf32>
      tpu.vector_store %arg3[%c0, %c0_7], %18 {strides = array<i32>} : memref<16x16xf32, #tpu.memory_space<vmem>>, vector<16x16xf32>,
    } else {
    }
    %11 = arith.extui %7 : i1 to i32
    %cst_3 = arith.constant 0.353553385 : f32
    %c0_i32_4 = arith.constant 0 : i32
    %12 = arith.cmpi ne, %11, %c0_i32_4 : i32
    scf.if %12 {
      %c31 = arith.constant 31 : index
      %16 = memref.load %arg2[%c31] : memref<32xf32, #tpu.memory_space<smem>>
      %17 = arith.mulf %16, %cst_3 : f32
      %18 = vector.broadcast %17 : f32 to vector<16x16xf32>
      %c0 = arith.constant 0 : index
      %c0_7 = arith.constant 0 : index
      %19 = vector.load %arg3[%c0, %c0_7] : memref<16x16xf32, #tpu.memory_space<vmem>>, vector<16x16xf32>
      tpu.vector_store %arg3[%c0, %c0_7], %18 {strides = array<i32>} : memref<16x16xf32, #tpu.memory_space<vmem>>, vector<16x16xf32>,
    } else {
    }
    %true = arith.constant true
    %13 = arith.xori %8, %true : i1
    %14 = arith.extui %13 : i1 to i32
    %cst_5 = arith.constant 0.353553385 : f32
    %c0_i32_6 = arith.constant 0 : i32
    %15 = arith.cmpi ne, %14, %c0_i32_6 : i32
    scf.if %15 {
      %16 = tpu.iota {dimensions = array<i32: 0>} : vector<16x16xi32>
      %17 = vector.broadcast %0 : i32 to vector<16x16xi32>
      %18 = arith.addi %17, %16 : vector<16x16xi32>
      %19 = tpu.iota {dimensions = array<i32: 1>} : vector<16x16xi32>
      %20 = vector.broadcast %1 : i32 to vector<16x16xi32>
      %21 = arith.addi %20, %19 : vector<16x16xi32>
      %22 = arith.subi %18, %21 : vector<16x16xi32>
      %c0_i32_7 = arith.constant 0 : i32
      %23 = vector.broadcast %c0_i32_7 : i32 to vector<16x16xi32>
      %24 = arith.cmpi slt, %22, %23 : vector<16x16xi32>
      %c16_i32_8 = arith.constant 16 : i32
      %c0_i32_9 = arith.constant 0 : i32
      %25 = vector.broadcast %c16_i32_8 : i32 to vector<16x16xi32>
      %26 = vector.broadcast %c0_i32_9 : i32 to vector<16x16xi32>
      %27 = arith.select %24, %25, %26 : vector<16x16xi1>, vector<16x16xi32>
      %28 = math.absi %22 : vector<16x16xi32>
      %c8_i32 = arith.constant 8 : i32
      %29 = vector.broadcast %c8_i32 : i32 to vector<16x16xi32>
      %30 = arith.cmpi slt, %28, %29 : vector<16x16xi32>
      %c8_i32_10 = arith.constant 8 : i32
      %31 = vector.broadcast %c8_i32_10 : i32 to vector<16x16xi32>
      %32 = arith.maxsi %28, %31 : vector<16x16xi32>
      %33 = arith.sitofp %32 : vector<16x16xi32> to vector<16x16xf32>
      %cst_11 = arith.constant 1.250000e-01 : f32
      %34 = vector.broadcast %cst_11 : f32 to vector<16x16xf32>
      %35 = arith.mulf %33, %34 : vector<16x16xf32>
      %36 = math.log %35 : vector<16x16xf32>
      %cst_12 = arith.constant 2.885390e+00 : f32
      %37 = vector.broadcast %cst_12 : f32 to vector<16x16xf32>
      %38 = arith.mulf %36, %37 : vector<16x16xf32>
      %39 = arith.fptosi %38 : vector<16x16xf32> to vector<16x16xi32>
      %c8_i32_13 = arith.constant 8 : i32
      %40 = vector.broadcast %c8_i32_13 : i32 to vector<16x16xi32>
      %41 = arith.addi %40, %39 : vector<16x16xi32>
      %c15_i32_14 = arith.constant 15 : i32
      %42 = vector.broadcast %c15_i32_14 : i32 to vector<16x16xi32>
      %43 = arith.minsi %41, %42 : vector<16x16xi32>
      %44 = arith.select %30, %28, %43 : vector<16x16xi1>, vector<16x16xi32>
      %45 = arith.addi %44, %27 : vector<16x16xi32>
      %c0 = arith.constant 0 : index
      %46 = memref.load %arg2[%c0] : memref<32xf32, #tpu.memory_space<smem>>
      %47 = arith.mulf %46, %cst_5 : f32
      %48 = vector.broadcast %47 : f32 to vector<16x16xf32>
      %c1_i32 = arith.constant 1 : i32
      %49 = vector.broadcast %c1_i32 : i32 to vector<16x16xi32>
      %50 = arith.cmpi eq, %45, %49 : vector<16x16xi32>
      %c1 = arith.constant 1 : index
      %51 = memref.load %arg2[%c1] : memref<32xf32, #tpu.memory_space<smem>>
      %52 = arith.mulf %51, %cst_5 : f32
      %53 = vector.broadcast %52 : f32 to vector<16x16xf32>
      %54 = arith.select %50, %53, %48 : vector<16x16xi1>, vector<16x16xf32>
      %c2_i32 = arith.constant 2 : i32
      %55 = vector.broadcast %c2_i32 : i32 to vector<16x16xi32>
      %56 = arith.cmpi eq, %45, %55 : vector<16x16xi32>
      %c2 = arith.constant 2 : index
      %57 = memref.load %arg2[%c2] : memref<32xf32, #tpu.memory_space<smem>>
      %58 = arith.mulf %57, %cst_5 : f32
      %59 = vector.broadcast %58 : f32 to vector<16x16xf32>
      %60 = arith.select %56, %59, %54 : vector<16x16xi1>, vector<16x16xf32>
      %c3_i32 = arith.constant 3 : i32
      %61 = vector.broadcast %c3_i32 : i32 to vector<16x16xi32>
      %62 = arith.cmpi eq, %45, %61 : vector<16x16xi32>
      %c3 = arith.constant 3 : index
      %63 = memref.load %arg2[%c3] : memref<32xf32, #tpu.memory_space<smem>>
      %64 = arith.mulf %63, %cst_5 : f32
      %65 = vector.broadcast %64 : f32 to vector<16x16xf32>
      %66 = arith.select %62, %65, %60 : vector<16x16xi1>, vector<16x16xf32>
      %c4_i32 = arith.constant 4 : i32
      %67 = vector.broadcast %c4_i32 : i32 to vector<16x16xi32>
      %68 = arith.cmpi eq, %45, %67 : vector<16x16xi32>
      %c4 = arith.constant 4 : index
      %69 = memref.load %arg2[%c4] : memref<32xf32, #tpu.memory_space<smem>>
      %70 = arith.mulf %69, %cst_5 : f32
      %71 = vector.broadcast %70 : f32 to vector<16x16xf32>
      %72 = arith.select %68, %71, %66 : vector<16x16xi1>, vector<16x16xf32>
      %c5_i32 = arith.constant 5 : i32
      %73 = vector.broadcast %c5_i32 : i32 to vector<16x16xi32>
      %74 = arith.cmpi eq, %45, %73 : vector<16x16xi32>
      %c5 = arith.constant 5 : index
      %75 = memref.load %arg2[%c5] : memref<32xf32, #tpu.memory_space<smem>>
      %76 = arith.mulf %75, %cst_5 : f32
      %77 = vector.broadcast %76 : f32 to vector<16x16xf32>
      %78 = arith.select %74, %77, %72 : vector<16x16xi1>, vector<16x16xf32>
      %c6_i32 = arith.constant 6 : i32
      %79 = vector.broadcast %c6_i32 : i32 to vector<16x16xi32>
      %80 = arith.cmpi eq, %45, %79 : vector<16x16xi32>
      %c6 = arith.constant 6 : index
      %81 = memref.load %arg2[%c6] : memref<32xf32, #tpu.memory_space<smem>>
      %82 = arith.mulf %81, %cst_5 : f32
      %83 = vector.broadcast %82 : f32 to vector<16x16xf32>
      %84 = arith.select %80, %83, %78 : vector<16x16xi1>, vector<16x16xf32>
      %c7_i32 = arith.constant 7 : i32
      %85 = vector.broadcast %c7_i32 : i32 to vector<16x16xi32>
      %86 = arith.cmpi eq, %45, %85 : vector<16x16xi32>
      %c7 = arith.constant 7 : index
      %87 = memref.load %arg2[%c7] : memref<32xf32, #tpu.memory_space<smem>>
      %88 = arith.mulf %87, %cst_5 : f32
      %89 = vector.broadcast %88 : f32 to vector<16x16xf32>
      %90 = arith.select %86, %89, %84 : vector<16x16xi1>, vector<16x16xf32>
      %c8_i32_15 = arith.constant 8 : i32
      %91 = vector.broadcast %c8_i32_15 : i32 to vector<16x16xi32>
      %92 = arith.cmpi eq, %45, %91 : vector<16x16xi32>
      %c8 = arith.constant 8 : index
      %93 = memref.load %arg2[%c8] : memref<32xf32, #tpu.memory_space<smem>>
      %94 = arith.mulf %93, %cst_5 : f32
      %95 = vector.broadcast %94 : f32 to vector<16x16xf32>
      %96 = arith.select %92, %95, %90 : vector<16x16xi1>, vector<16x16xf32>
      %c9_i32 = arith.constant 9 : i32
      %97 = vector.broadcast %c9_i32 : i32 to vector<16x16xi32>
      %98 = arith.cmpi eq, %45, %97 : vector<16x16xi32>
      %c9 = arith.constant 9 : index
      %99 = memref.load %arg2[%c9] : memref<32xf32, #tpu.memory_space<smem>>
      %100 = arith.mulf %99, %cst_5 : f32
      %101 = vector.broadcast %100 : f32 to vector<16x16xf32>
      %102 = arith.select %98, %101, %96 : vector<16x16xi1>, vector<16x16xf32>
      %c10_i32 = arith.constant 10 : i32
      %103 = vector.broadcast %c10_i32 : i32 to vector<16x16xi32>
      %104 = arith.cmpi eq, %45, %103 : vector<16x16xi32>
      %c10 = arith.constant 10 : index
      %105 = memref.load %arg2[%c10] : memref<32xf32, #tpu.memory_space<smem>>
      %106 = arith.mulf %105, %cst_5 : f32
      %107 = vector.broadcast %106 : f32 to vector<16x16xf32>
      %108 = arith.select %104, %107, %102 : vector<16x16xi1>, vector<16x16xf32>
      %c11_i32 = arith.constant 11 : i32
      %109 = vector.broadcast %c11_i32 : i32 to vector<16x16xi32>
      %110 = arith.cmpi eq, %45, %109 : vector<16x16xi32>
      %c11 = arith.constant 11 : index
      %111 = memref.load %arg2[%c11] : memref<32xf32, #tpu.memory_space<smem>>
      %112 = arith.mulf %111, %cst_5 : f32
      %113 = vector.broadcast %112 : f32 to vector<16x16xf32>
      %114 = arith.select %110, %113, %108 : vector<16x16xi1>, vector<16x16xf32>
      %c12_i32 = arith.constant 12 : i32
      %115 = vector.broadcast %c12_i32 : i32 to vector<16x16xi32>
      %116 = arith.cmpi eq, %45, %115 : vector<16x16xi32>
      %c12 = arith.constant 12 : index
      %117 = memref.load %arg2[%c12] : memref<32xf32, #tpu.memory_space<smem>>
      %118 = arith.mulf %117, %cst_5 : f32
      %119 = vector.broadcast %118 : f32 to vector<16x16xf32>
      %120 = arith.select %116, %119, %114 : vector<16x16xi1>, vector<16x16xf32>
      %c13_i32 = arith.constant 13 : i32
      %121 = vector.broadcast %c13_i32 : i32 to vector<16x16xi32>
      %122 = arith.cmpi eq, %45, %121 : vector<16x16xi32>
      %c13 = arith.constant 13 : index
      %123 = memref.load %arg2[%c13] : memref<32xf32, #tpu.memory_space<smem>>
      %124 = arith.mulf %123, %cst_5 : f32
      %125 = vector.broadcast %124 : f32 to vector<16x16xf32>
      %126 = arith.select %122, %125, %120 : vector<16x16xi1>, vector<16x16xf32>
      %c14_i32 = arith.constant 14 : i32
      %127 = vector.broadcast %c14_i32 : i32 to vector<16x16xi32>
      %128 = arith.cmpi eq, %45, %127 : vector<16x16xi32>
      %c14 = arith.constant 14 : index
      %129 = memref.load %arg2[%c14] : memref<32xf32, #tpu.memory_space<smem>>
      %130 = arith.mulf %129, %cst_5 : f32
      %131 = vector.broadcast %130 : f32 to vector<16x16xf32>
      %132 = arith.select %128, %131, %126 : vector<16x16xi1>, vector<16x16xf32>
      %c15_i32_16 = arith.constant 15 : i32
      %133 = vector.broadcast %c15_i32_16 : i32 to vector<16x16xi32>
      %134 = arith.cmpi eq, %45, %133 : vector<16x16xi32>
      %c15 = arith.constant 15 : index
      %135 = memref.load %arg2[%c15] : memref<32xf32, #tpu.memory_space<smem>>
      %136 = arith.mulf %135, %cst_5 : f32
      %137 = vector.broadcast %136 : f32 to vector<16x16xf32>
      %138 = arith.select %134, %137, %132 : vector<16x16xi1>, vector<16x16xf32>
      %c16_i32_17 = arith.constant 16 : i32
      %139 = vector.broadcast %c16_i32_17 : i32 to vector<16x16xi32>
      %140 = arith.cmpi eq, %45, %139 : vector<16x16xi32>
      %c16 = arith.constant 16 : index
      %141 = memref.load %arg2[%c16] : memref<32xf32, #tpu.memory_space<smem>>
      %142 = arith.mulf %141, %cst_5 : f32
      %143 = vector.broadcast %142 : f32 to vector<16x16xf32>
      %144 = arith.select %140, %143, %138 : vector<16x16xi1>, vector<16x16xf32>
      %c17_i32 = arith.constant 17 : i32
      %145 = vector.broadcast %c17_i32 : i32 to vector<16x16xi32>
      %146 = arith.cmpi eq, %45, %145 : vector<16x16xi32>
      %c17 = arith.constant 17 : index
      %147 = memref.load %arg2[%c17] : memref<32xf32, #tpu.memory_space<smem>>
      %148 = arith.mulf %147, %cst_5 : f32
      %149 = vector.broadcast %148 : f32 to vector<16x16xf32>
      %150 = arith.select %146, %149, %144 : vector<16x16xi1>, vector<16x16xf32>
      %c18_i32 = arith.constant 18 : i32
      %151 = vector.broadcast %c18_i32 : i32 to vector<16x16xi32>
      %152 = arith.cmpi eq, %45, %151 : vector<16x16xi32>
      %c18 = arith.constant 18 : index
      %153 = memref.load %arg2[%c18] : memref<32xf32, #tpu.memory_space<smem>>
      %154 = arith.mulf %153, %cst_5 : f32
      %155 = vector.broadcast %154 : f32 to vector<16x16xf32>
      %156 = arith.select %152, %155, %150 : vector<16x16xi1>, vector<16x16xf32>
      %c19_i32 = arith.constant 19 : i32
      %157 = vector.broadcast %c19_i32 : i32 to vector<16x16xi32>
      %158 = arith.cmpi eq, %45, %157 : vector<16x16xi32>
      %c19 = arith.constant 19 : index
      %159 = memref.load %arg2[%c19] : memref<32xf32, #tpu.memory_space<smem>>
      %160 = arith.mulf %159, %cst_5 : f32
      %161 = vector.broadcast %160 : f32 to vector<16x16xf32>
      %162 = arith.select %158, %161, %156 : vector<16x16xi1>, vector<16x16xf32>
      %c20_i32 = arith.constant 20 : i32
      %163 = vector.broadcast %c20_i32 : i32 to vector<16x16xi32>
      %164 = arith.cmpi eq, %45, %163 : vector<16x16xi32>
      %c20 = arith.constant 20 : index
      %165 = memref.load %arg2[%c20] : memref<32xf32, #tpu.memory_space<smem>>
      %166 = arith.mulf %165, %cst_5 : f32
      %167 = vector.broadcast %166 : f32 to vector<16x16xf32>
      %168 = arith.select %164, %167, %162 : vector<16x16xi1>, vector<16x16xf32>
      %c21_i32 = arith.constant 21 : i32
      %169 = vector.broadcast %c21_i32 : i32 to vector<16x16xi32>
      %170 = arith.cmpi eq, %45, %169 : vector<16x16xi32>
      %c21 = arith.constant 21 : index
      %171 = memref.load %arg2[%c21] : memref<32xf32, #tpu.memory_space<smem>>
      %172 = arith.mulf %171, %cst_5 : f32
      %173 = vector.broadcast %172 : f32 to vector<16x16xf32>
      %174 = arith.select %170, %173, %168 : vector<16x16xi1>, vector<16x16xf32>
      %c22_i32 = arith.constant 22 : i32
      %175 = vector.broadcast %c22_i32 : i32 to vector<16x16xi32>
      %176 = arith.cmpi eq, %45, %175 : vector<16x16xi32>
      %c22 = arith.constant 22 : index
      %177 = memref.load %arg2[%c22] : memref<32xf32, #tpu.memory_space<smem>>
      %178 = arith.mulf %177, %cst_5 : f32
      %179 = vector.broadcast %178 : f32 to vector<16x16xf32>
      %180 = arith.select %176, %179, %174 : vector<16x16xi1>, vector<16x16xf32>
      %c23_i32 = arith.constant 23 : i32
      %181 = vector.broadcast %c23_i32 : i32 to vector<16x16xi32>
      %182 = arith.cmpi eq, %45, %181 : vector<16x16xi32>
      %c23 = arith.constant 23 : index
      %183 = memref.load %arg2[%c23] : memref<32xf32, #tpu.memory_space<smem>>
      %184 = arith.mulf %183, %cst_5 : f32
      %185 = vector.broadcast %184 : f32 to vector<16x16xf32>
      %186 = arith.select %182, %185, %180 : vector<16x16xi1>, vector<16x16xf32>
      %c24_i32 = arith.constant 24 : i32
      %187 = vector.broadcast %c24_i32 : i32 to vector<16x16xi32>
      %188 = arith.cmpi eq, %45, %187 : vector<16x16xi32>
      %c24 = arith.constant 24 : index
      %189 = memref.load %arg2[%c24] : memref<32xf32, #tpu.memory_space<smem>>
      %190 = arith.mulf %189, %cst_5 : f32
      %191 = vector.broadcast %190 : f32 to vector<16x16xf32>
      %192 = arith.select %188, %191, %186 : vector<16x16xi1>, vector<16x16xf32>
      %c25_i32 = arith.constant 25 : i32
      %193 = vector.broadcast %c25_i32 : i32 to vector<16x16xi32>
      %194 = arith.cmpi eq, %45, %193 : vector<16x16xi32>
      %c25 = arith.constant 25 : index
      %195 = memref.load %arg2[%c25] : memref<32xf32, #tpu.memory_space<smem>>
      %196 = arith.mulf %195, %cst_5 : f32
      %197 = vector.broadcast %196 : f32 to vector<16x16xf32>
      %198 = arith.select %194, %197, %192 : vector<16x16xi1>, vector<16x16xf32>
      %c26_i32 = arith.constant 26 : i32
      %199 = vector.broadcast %c26_i32 : i32 to vector<16x16xi32>
      %200 = arith.cmpi eq, %45, %199 : vector<16x16xi32>
      %c26 = arith.constant 26 : index
      %201 = memref.load %arg2[%c26] : memref<32xf32, #tpu.memory_space<smem>>
      %202 = arith.mulf %201, %cst_5 : f32
      %203 = vector.broadcast %202 : f32 to vector<16x16xf32>
      %204 = arith.select %200, %203, %198 : vector<16x16xi1>, vector<16x16xf32>
      %c27_i32 = arith.constant 27 : i32
      %205 = vector.broadcast %c27_i32 : i32 to vector<16x16xi32>
      %206 = arith.cmpi eq, %45, %205 : vector<16x16xi32>
      %c27 = arith.constant 27 : index
      %207 = memref.load %arg2[%c27] : memref<32xf32, #tpu.memory_space<smem>>
      %208 = arith.mulf %207, %cst_5 : f32
      %209 = vector.broadcast %208 : f32 to vector<16x16xf32>
      %210 = arith.select %206, %209, %204 : vector<16x16xi1>, vector<16x16xf32>
      %c28_i32 = arith.constant 28 : i32
      %211 = vector.broadcast %c28_i32 : i32 to vector<16x16xi32>
      %212 = arith.cmpi eq, %45, %211 : vector<16x16xi32>
      %c28 = arith.constant 28 : index
      %213 = memref.load %arg2[%c28] : memref<32xf32, #tpu.memory_space<smem>>
      %214 = arith.mulf %213, %cst_5 : f32
      %215 = vector.broadcast %214 : f32 to vector<16x16xf32>
      %216 = arith.select %212, %215, %210 : vector<16x16xi1>, vector<16x16xf32>
      %c29_i32 = arith.constant 29 : i32
      %217 = vector.broadcast %c29_i32 : i32 to vector<16x16xi32>
      %218 = arith.cmpi eq, %45, %217 : vector<16x16xi32>
      %c29 = arith.constant 29 : index
      %219 = memref.load %arg2[%c29] : memref<32xf32, #tpu.memory_space<smem>>
      %220 = arith.mulf %219, %cst_5 : f32
      %221 = vector.broadcast %220 : f32 to vector<16x16xf32>
      %222 = arith.select %218, %221, %216 : vector<16x16xi1>, vector<16x16xf32>
      %c30_i32 = arith.constant 30 : i32
      %223 = vector.broadcast %c30_i32 : i32 to vector<16x16xi32>
      %224 = arith.cmpi eq, %45, %223 : vector<16x16xi32>
      %c30 = arith.constant 30 : index
      %225 = memref.load %arg2[%c30] : memref<32xf32, #tpu.memory_space<smem>>
      %226 = arith.mulf %225, %cst_5 : f32
      %227 = vector.broadcast %226 : f32 to vector<16x16xf32>
      %228 = arith.select %224, %227, %222 : vector<16x16xi1>, vector<16x16xf32>
      %c31_i32 = arith.constant 31 : i32
      %229 = vector.broadcast %c31_i32 : i32 to vector<16x16xi32>
      %230 = arith.cmpi eq, %45, %229 : vector<16x16xi32>
      %c31 = arith.constant 31 : index
      %231 = memref.load %arg2[%c31] : memref<32xf32, #tpu.memory_space<smem>>
      %232 = arith.mulf %231, %cst_5 : f32
      %233 = vector.broadcast %232 : f32 to vector<16x16xf32>
      %234 = arith.select %230, %233, %228 : vector<16x16xi1>, vector<16x16xf32>
      %c0_18 = arith.constant 0 : index
      %c0_19 = arith.constant 0 : index
      %235 = vector.load %arg3[%c0_18, %c0_19] : memref<16x16xf32, #tpu.memory_space<vmem>>, vector<16x16xf32>
      tpu.vector_store %arg3[%c0_18, %c0_19], %234 {strides = array<i32>} : memref<16x16xf32, #tpu.memory_space<vmem>>, vector<16x16xf32>,
    } else {
    }
    return
  }
  func.func @transform_0(%arg0: i32, %arg1: i32) -> i32 {
    %c0_i32 = arith.constant 0 : i32
    %c0_i32_0 = arith.constant 0 : i32
    return %c0_i32 : i32
  }
  func.func @transform_1(%arg0: i32, %arg1: i32) -> (i32, i32) {
    %c0_i32 = arith.constant 0 : i32
    return %arg0, %arg1 : i32, i32
  }
}

</mosaic_0001>

<bundles_post_ra>
// kernel: tpu_custom_call.1
= control target key start
LH: loop header
LB: loop body
LE: loop exit
PB: predicated region body
PF: predicated region fallthrough
CT: control target
= control target key end

     0   :  { %s832_s0 = inlined_call_operand.hbm [shape: f32[32], index: 0, kind: input, shape index: {}]   ;;  %s833_s1 = inlined_call_operand.hbm [shape: f32[16,16], index: 1, kind: output, shape index: {}]  }
   0x1   :  { %841 = sst [smem:[#allocation15_spill]] %s833_s1 }
   0x2   :  { %6 = vsyncpa [#allocation4], 0 }
   0x3   :  { %7 = vsyncpa [#allocation3], 0  ;;  %s387_s8 = scalar_lea.hbm %s832_s0, 16 }
   0x4   :  { %p388_p0 = scmp.ne.s32.totalorder %s832_s0, %s387_s8  ;;  %p391_p1 = scmp.lt.u32.totalorder %s387_s8, %s832_s0 }
   0x6   :  { %p393_p2 = pnand %p391_p1, %p388_p0 }
   0x8   :  { %396 = shalt.err (!%p393_p2)
}
   0x9   :  { %s423_s13 = smov [#allocation2]  }
   0xa   :  { %15 = dma.hbm_to_smem %s832_s0, 16, %s423_s13, [#allocation4]  }
   0xb   :  { %419 = dma.done.wait [#allocation4], 16  }
   0xc   :  { %420 = vsyncadd [#allocation4], 4294967280 }
   0xd   :  { %19 = sfence }
   0xe   :  { %v51_v0 = vlaneseq  ;;  %s450_s16 = sld [smem:[#allocation2]]  ;;  %s452_s17 = sld [smem:[#allocation2 + $0x1]]  ;;  %v424_v19 = vmov 0  }
   0xf   :  { %s454_s18 = sld [smem:[#allocation2 + $0x2]]  ;;  %s456_s19 = sld [smem:[#allocation2 + $0x3]] }
  0x10   :  { %v52_v1 = vshrl.u32 %v51_v0, 7  ;;  %v58_v2 = vand.u32 127, %v51_v0  ;;  %s458_s20 = sld [smem:[#allocation2 + $0x4]]  ;;  %s462_s0 = sld [smem:[#allocation2 + $0x5]] }
  0x11   :  { %s464_s21 = sld [smem:[#allocation2 + $0x6]]  ;;  %s469_s22 = sld [smem:[#allocation2 + $0x7]] }
  0x12   :  { %v53_v3 = vadd.s32 8, %v52_v1  ;;  %v460_v4 = vsub.s32 %v52_v1, %v58_v2  ;;  %s471_s23 = sld [smem:[#allocation2 + $0x8]]  ;;  %s474_s25 = sld [smem:[#allocation2 + $0x9]] }
  0x13   :  { %s481_s27 = sld [smem:[#allocation2 + $0xa]]  ;;  %s484_s29 = sld [smem:[#allocation2 + $0xb]] }
  0x14   :  { %v466_v5 = vsub.s32 %v53_v3, %v58_v2  ;;  %v67_v6 = vsub.s32 0, %v460_v4  ;;  %s491_s2 = sld [smem:[#allocation2 + $0xc]]  ;;  %s495_s4 = sld [smem:[#allocation2 + $0xd]]  ;;  %vm63_vm2 = vcmp.lt.s32.totalorder %v460_v4, 0 }
  0x15   :  { %s499_s6 = sld [smem:[#allocation2 + $0xe]]  ;;  %s503_s8 = sld [smem:[#allocation2 + $0xf]]  ;;  %v65_v20 = vsel %vm63_vm2, 16, %v424_v19 }
  0x16   :  { %v477_v7 = vmin.u32 %v67_v6, %v460_v4  ;;  %v69_v8 = vsub.s32 0, %v466_v5  ;;  %s506_s10 = sld [smem:[#allocation2 + $0x10]]  ;;  %s509_s12 = sld [smem:[#allocation2 + $0x11]]  ;;  %vm64_vm3 = vcmp.lt.s32.totalorder %v466_v5, 0 }
  0x17   :  { %s512_s14 = sld [smem:[#allocation2 + $0x12]]  ;;  %s515_s7 = sld [smem:[#allocation2 + $0x13]]  ;;  %v66_v23 = vsel %vm64_vm3, 16, %v424_v19 }
  0x18   :  { %v487_v9 = vmin.u32 %v69_v8, %v466_v5  ;;  %vm73_vm0 = vcmp.gt.s32.totalorder %v477_v7, 8  ;;  %s518_s5 = sld [smem:[#allocation2 + $0x14]]  ;;  %s521_s11 = sld [smem:[#allocation2 + $0x15]]  ;;  %vm71_vm4 = vcmp.lt.s32.totalorder %v477_v7, 8 }
  0x19   :  { %842 = sst [smem:[#allocation8_spill]] %s481_s27  ;;  %v74_v10 = vsel %vm73_vm0, %v477_v7, 8  ;;  %s524_s28 = sld [smem:[#allocation2 + $0x16]] }
  0x1a   :  { %843 = sst [smem:[#allocation9_spill]] %s484_s29  ;;  %vm75_vm1 = vcmp.gt.s32.totalorder %v487_v9, 8  ;;  %v77_v11 = vcvt.s32.f32 %v74_v10  ;;  %s527_s13 = sld [smem:[#allocation2 + $0x17]]  ;;  %vm72_vm5 = vcmp.lt.s32.totalorder %v487_v9, 8 }
  0x1b   :  { %v76_v12 = vsel %vm75_vm1, %v487_v9, 8  ;;  %s530_s15 = sld [smem:[#allocation2 + $0x18]]  ;;  %s533_s27 = sld [smem:[#allocation2 + $0x19]] }
  0x1c   :  { %v78_v13 = vcvt.s32.f32 %v76_v12  ;;  %v79_v14 = vmul.f32 0.125, %v77_v11  ;;  %s536_s29 = sld [smem:[#allocation2 + $0x1a]]  ;;  %s540_s30 = sld [smem:[#allocation2 + $0x1b]] }
  0x1d   :  { %844 = sst [smem:[#allocation10_spill]] %s512_s14  ;;  %s544_s26 = sld [smem:[#allocation2 + $0x1c]] }
  0x1e   :  { %v80_v15 = vmul.f32 0.125, %v78_v13  ;;  %383 = vlog2.f32 %v79_v14  ;;  %845 = sst [smem:[#allocation11_spill]] %s518_s5  ;;  %s547_s9 = sld [smem:[#allocation2 + $0x1d]] }
  0x1f   :  { %846 = sst [smem:[#allocation12_spill]] %s521_s11  ;;  %s550_s14 = sld [smem:[#allocation2 + $0x1e]] }
  0x20   :  { %385 = vlog2.f32 %v80_v15  ;;  %847 = sst [smem:[#allocation13_spill]] %s524_s28  ;;  %s849_s1 = smul.f32 0.35355338, %s450_s16 }
  0x21   :  { %s850_s5 = smul.f32 0.35355338, %s452_s17  ;;  %s854_s28 = sld [smem:[#allocation9_spill]] }
  0x22   :  { %v556_v24 = vstv %s849_s1  ;;  %s259_s3 = smul.f32 0.35355338, %s527_s13  ;;  %s572_s16 = sld [smem:[#allocation2 + $0x1f]] }
  0x23   :  { %v560_v25 = vstv %s850_s5  ;;  %s851_s11 = smul.f32 0.35355338, %s454_s18 }
  0x24   :  { %s853_s24 = smul.f32 0.35355338, %s456_s19  ;;  %v659_v55 = vstv %s259_s3 }
  0x25   :  { %848 = sst [smem:[#allocation14_spill]] %s550_s14  ;;  %s852_s14 = sld [smem:[#allocation8_spill]]  ;;  %v565_v28 = vstv %s851_s11 }
  0x26   :  { %v569_v29 = vstv %s853_s24  ;;  %s266_s1 = smul.f32 0.35355338, %s530_s15  ;;  %s860_s11 = sld [smem:[#allocation10_spill]] }
  0x27   :  { %s855_s17 = smul.f32 0.35355338, %s458_s20 }
  0x28   :  { %v384_v16 = vpop.eup %383  ;;  %s856_s5 = smul.f32 0.35355338, %s462_s0  ;;  %v666_v57 = vstv %s266_s1 }
  0x29   :  { %v82_v17 = vmul.f32 0.6931472, %v384_v16  ;;  %v577_v30 = vstv %s855_s17  ;;  %s857_s18 = smul.f32 0.35355338, %s464_s21 }
  0x2a   :  { %v386_v18 = vpop.eup %385  ;;  %v581_v31 = vstv %s856_s5  ;;  %s273_s19 = smul.f32 0.35355338, %s533_s27  ;;  %s425_s27 = smov [#allocation5]  }
  0x2b   :  { %v84_v21 = vmul.f32 0.6931472, %v386_v18  ;;  %v85_v22 = vmul.f32 2.88539, %v82_v17  ;;  %v585_v32 = vstv %s857_s18  ;;  %s858_s24 = smul.f32 0.35355338, %s469_s22 }
  0x2c   :  { %s859_s20 = smul.f32 0.35355338, %s471_s23  ;;  %s865_s18 = sld [smem:[#allocation11_spill]]  ;;  %v670_v58 = vstv %s273_s19 }
  0x2d   :  { %v86_v26 = vmul.f32 2.88539, %v84_v21  ;;  %v374_v27 = vtrunc.f32 %v85_v22  ;;  %v590_v35 = vstv %s858_s24  ;;  %s861_s21 = smul.f32 0.35355338, %s474_s25  ;;  %s866_s23 = sld [smem:[#allocation14_spill]] }
  0x2e   :  { %v594_v36 = vstv %s859_s20  ;;  %s862_s17 = smul.f32 0.35355338, %s852_s14  ;;  %s867_s20 = sld [smem:[#allocation12_spill]] }
  0x2f   :  { %v375_v33 = vcvt.f32.s32 %v374_v27  ;;  %v376_v34 = vtrunc.f32 %v86_v26  ;;  %v599_v37 = vstv %s861_s21  ;;  %s863_s5 = smul.f32 0.35355338, %s854_s28  ;;  %s869_s25 = sld [smem:[#allocation13_spill]] }
  0x30   :  { %v603_v38 = vstv %s862_s17  ;;  %s864_s22 = smul.f32 0.35355338, %s491_s2 }
  0x31   :  { %v607_v39 = vstv %s863_s5  ;;  %s287_s24 = smul.f32 0.35355338, %s540_s30  ;;  %v377_v41 = vcvt.f32.s32 %v376_v34  ;;  %v89_v42 = vadd.s32 8, %v375_v33 }
  0x32   :  { %v611_v40 = vstv %s864_s22  ;;  %s868_s0 = smul.f32 0.35355338, %s495_s4 }
  0x33   :  { %s870_s14 = smul.f32 0.35355338, %s499_s6  ;;  %v90_v49 = vadd.s32 8, %v377_v41  ;;  %vm91_vm6 = vcmp.lt.s32.totalorder %v89_v42, 15  ;;  %v679_v62 = vstv %s287_s24 }
  0x34   :  { %v616_v43 = vstv %s868_s0  ;;  %s294_s28 = smul.f32 0.35355338, %s544_s26  ;;  %v92_v52 = vsel %vm91_vm6, %v89_v42, 15 }
  0x35   :  { %v620_v44 = vstv %s870_s14  ;;  %s871_s21 = smul.f32 0.35355338, %s503_s8  ;;  %vm93_vm7 = vcmp.lt.s32.totalorder %v90_v49, 15  ;;  %v95_v56 = vsel %vm71_vm4, %v477_v7, %v92_v52 }
  0x36   :  { %s872_s2 = smul.f32 0.35355338, %s506_s10  ;;  %v94_v59 = vsel %vm93_vm7, %v90_v49, 15  ;;  %v673_v60 = vadd.s32 %v95_v56, %v65_v20  ;;  %v684_v0 = vstv %s294_s28 }
  0x37   :  { %v625_v45 = vstv %s871_s21  ;;  %s873_s30 = smul.f32 0.35355338, %s509_s12  ;;  %v96_v63 = vsel %vm72_vm5, %v487_v9, %v94_v59 }
  0x38   :  { %v629_v46 = vstv %s872_s2  ;;  %s874_s4 = smul.f32 0.35355338, %s860_s11  ;;  %v690_v3 = vadd.s32 %v96_v63, %v66_v23  ;;  %vm102_vm8 = vcmp.eq.s32.totalorder %v673_v60, 1  ;;  %vm109_vm9 = vcmp.eq.s32.totalorder %v673_v60, 2 }
  0x39   :  { %v633_v47 = vstv %s873_s30  ;;  %s301_s6 = smul.f32 0.35355338, %s547_s9  ;;  %vm116_vm10 = vcmp.eq.s32.totalorder %v673_v60, 3  ;;  %v107_v4 = vsel %vm102_vm8, %v560_v25, %v556_v24  ;;  %vm123_vm11 = vcmp.eq.s32.totalorder %v673_v60, 4 }
  0x3a   :  { %v637_v48 = vstv %s874_s4  ;;  %s875_s26 = smul.f32 0.35355338, %s515_s7  ;;  %vm130_vm12 = vcmp.eq.s32.totalorder %v673_v60, 5  ;;  %vm103_vm13 = vcmp.eq.s32.totalorder %v690_v3, 1  ;;  %vm110_vm14 = vcmp.eq.s32.totalorder %v690_v3, 2 }
  0x3b   :  { %s876_s8 = smul.f32 0.35355338, %s865_s18  ;;  %v686_v1 = vstv %s301_s6  ;;  %v114_v6 = vsel %vm109_vm9, %v565_v28, %v107_v4  ;;  %vm117_vm15 = vcmp.eq.s32.totalorder %v690_v3, 3  ;;  %v108_v7 = vsel %vm103_vm13, %v560_v25, %v556_v24 }
  0x3c   :  { %v642_v50 = vstv %s875_s26  ;;  %s308_s10 = smul.f32 0.35355338, %s866_s23  ;;  %v121_v8 = vsel %vm116_vm10, %v569_v29, %v114_v6  ;;  %vm124_vm0 = vcmp.eq.s32.totalorder %v690_v3, 4  ;;  %vm137_vm1 = vcmp.eq.s32.totalorder %v673_v60, 6 }
  0x3d   :  { %v646_v51 = vstv %s876_s8  ;;  %s877_s12 = smul.f32 0.35355338, %s867_s20  ;;  %v115_v9 = vsel %vm110_vm14, %v565_v28, %v108_v7  ;;  %v128_v10 = vsel %vm123_vm11, %v577_v30, %v121_v8  ;;  %vm131_vm2 = vcmp.eq.s32.totalorder %v690_v3, 5 }
  0x3e   :  { %s878_s0 = smul.f32 0.35355338, %s869_s25  ;;  %v688_v2 = vstv %s308_s10  ;;  %vm144_vm3 = vcmp.eq.s32.totalorder %v673_v60, 7  ;;  %v122_v11 = vsel %vm117_vm15, %v569_v29, %v115_v9  ;;  %v135_v12 = vsel %vm130_vm12, %v581_v31, %v128_v10 }
  0x3f   :  { %v651_v53 = vstv %s877_s12  ;;  %s315_s7 = smul.f32 0.35355338, %s572_s16  ;;  %vm138_vm4 = vcmp.eq.s32.totalorder %v690_v3, 6  ;;  %vm151_vm5 = vcmp.eq.s32.totalorder %v673_v60, 8  ;;  %v129_v13 = vsel %vm124_vm0, %v577_v30, %v122_v11 }
  0x40   :  { %v655_v54 = vstv %s878_s0  ;;  %s879_s9 = smul.f32 0.35355338, %s536_s29  ;;  %v142_v14 = vsel %vm137_vm1, %v585_v32, %v135_v12  ;;  %vm145_vm6 = vcmp.eq.s32.totalorder %v690_v3, 7  ;;  %vm158_vm7 = vcmp.eq.s32.totalorder %v673_v60, 9  ;;  %s327_s29 = sshll.u32 %s425_s27, 4  ;;  %s328_s29 = int_to_ptr.vmem [resolvable:$true] %s327_s29 }
  0x41   :  { %v699_v5 = vstv %s315_s7  ;;  %v136_v15 = vsel %vm131_vm2, %v581_v31, %v129_v13  ;;  %v149_v16 = vsel %vm144_vm3, %v590_v35, %v142_v14  ;;  %vm152_vm8 = vcmp.eq.s32.totalorder %v690_v3, 8  ;;  %s397_s3 = scalar_lea.vmem %s328_s29, 256  ;;  %p402_p4 = scmp.lt.s32.totalorder %s328_s29, %s328_s29 }
  0x42   :  { %v677_v61 = vstv %s879_s9  ;;  %vm165_vm9 = vcmp.eq.s32.totalorder %v673_v60, 10  ;;  %v143_v17 = vsel %vm138_vm4, %v585_v32, %v136_v15  ;;  %v156_v18 = vsel %vm151_vm5, %v594_v36, %v149_v16  ;;  %p398_p3 = scmp.ne.s32.totalorder %s328_s29, %s397_s3  ;;  %p403_p5 = scmp.lt.s32.totalorder %s397_s3, %s397_s3 }
  0x43   :  { %vm159_vm10 = vcmp.eq.s32.totalorder %v690_v3, 9  ;;  %vm172_vm11 = vcmp.eq.s32.totalorder %v673_v60, 11  ;;  %v150_v19 = vsel %vm145_vm6, %v590_v35, %v143_v17  ;;  %v163_v20 = vsel %vm158_vm7, %v599_v37, %v156_v18 }
  0x44   :  { %vm166_vm12 = vcmp.eq.s32.totalorder %v690_v3, 10  ;;  %vm179_vm13 = vcmp.eq.s32.totalorder %v673_v60, 12  ;;  %v157_v21 = vsel %vm152_vm8, %v594_v36, %v150_v19  ;;  %v170_v22 = vsel %vm165_vm9, %v603_v38, %v163_v20  ;;  %p404_p6 = por %p403_p5, %p402_p4 }
  0x45   :  { %vm173_vm14 = vcmp.eq.s32.totalorder %v690_v3, 11  ;;  %vm186_vm15 = vcmp.eq.s32.totalorder %v673_v60, 13  ;;  %v164_v23 = vsel %vm159_vm10, %v599_v37, %v157_v21  ;;  %v177_v24 = vsel %vm172_vm11, %v607_v39, %v170_v22 }
  0x46   :  { %vm180_vm0 = vcmp.eq.s32.totalorder %v690_v3, 12  ;;  %vm193_vm1 = vcmp.eq.s32.totalorder %v673_v60, 14  ;;  %v171_v25 = vsel %vm166_vm12, %v603_v38, %v164_v23  ;;  %v184_v26 = vsel %vm179_vm13, %v611_v40, %v177_v24  ;;  %p405_p7 = pnand %p404_p6, %p398_p3 }
  0x47   :  { %vm187_vm2 = vcmp.eq.s32.totalorder %v690_v3, 13  ;;  %vm200_vm3 = vcmp.eq.s32.totalorder %v673_v60, 15  ;;  %v178_v27 = vsel %vm173_vm14, %v607_v39, %v171_v25  ;;  %v191_v28 = vsel %vm186_vm15, %v616_v43, %v184_v26 }
  0x48   :  { %vm194_vm4 = vcmp.eq.s32.totalorder %v690_v3, 14  ;;  %vm207_vm5 = vcmp.eq.s32.totalorder %v673_v60, 16  ;;  %v185_v29 = vsel %vm180_vm0, %v611_v40, %v178_v27  ;;  %v198_v30 = vsel %vm193_vm1, %v620_v44, %v191_v28 }
  0x49   :  { %vm201_vm6 = vcmp.eq.s32.totalorder %v690_v3, 15  ;;  %vm214_vm7 = vcmp.eq.s32.totalorder %v673_v60, 17  ;;  %v192_v31 = vsel %vm187_vm2, %v616_v43, %v185_v29  ;;  %v205_v32 = vsel %vm200_vm3, %v625_v45, %v198_v30 }
  0x4a   :  { %vm208_vm8 = vcmp.eq.s32.totalorder %v690_v3, 16  ;;  %vm221_vm9 = vcmp.eq.s32.totalorder %v673_v60, 18  ;;  %v199_v33 = vsel %vm194_vm4, %v620_v44, %v192_v31  ;;  %v212_v34 = vsel %vm207_vm5, %v629_v46, %v205_v32 }
  0x4b   :  { %vm215_vm10 = vcmp.eq.s32.totalorder %v690_v3, 17  ;;  %vm228_vm11 = vcmp.eq.s32.totalorder %v673_v60, 19  ;;  %v206_v35 = vsel %vm201_vm6, %v625_v45, %v199_v33  ;;  %v219_v36 = vsel %vm214_vm7, %v633_v47, %v212_v34 }
  0x4c   :  { %vm222_vm12 = vcmp.eq.s32.totalorder %v690_v3, 18  ;;  %vm235_vm13 = vcmp.eq.s32.totalorder %v673_v60, 20  ;;  %v213_v37 = vsel %vm208_vm8, %v629_v46, %v206_v35  ;;  %v226_v38 = vsel %vm221_vm9, %v637_v48, %v219_v36 }
  0x4d   :  { %vm229_vm14 = vcmp.eq.s32.totalorder %v690_v3, 19  ;;  %vm242_vm15 = vcmp.eq.s32.totalorder %v673_v60, 21  ;;  %v220_v39 = vsel %vm215_vm10, %v633_v47, %v213_v37  ;;  %v233_v40 = vsel %vm228_vm11, %v642_v50, %v226_v38 }
  0x4e   :  { %vm236_vm0 = vcmp.eq.s32.totalorder %v690_v3, 20  ;;  %vm249_vm1 = vcmp.eq.s32.totalorder %v673_v60, 22  ;;  %v227_v41 = vsel %vm222_vm12, %v637_v48, %v220_v39  ;;  %v240_v42 = vsel %vm235_vm13, %v646_v51, %v233_v40 }
  0x4f   :  { %vm243_vm2 = vcmp.eq.s32.totalorder %v690_v3, 21  ;;  %vm256_vm3 = vcmp.eq.s32.totalorder %v673_v60, 23  ;;  %v234_v43 = vsel %vm229_vm14, %v642_v50, %v227_v41  ;;  %v247_v44 = vsel %vm242_vm15, %v651_v53, %v240_v42 }
  0x50   :  { %vm250_vm4 = vcmp.eq.s32.totalorder %v690_v3, 22  ;;  %vm263_vm5 = vcmp.eq.s32.totalorder %v673_v60, 24  ;;  %v241_v45 = vsel %vm236_vm0, %v646_v51, %v234_v43  ;;  %v254_v46 = vsel %vm249_vm1, %v655_v54, %v247_v44 }
  0x51   :  { %vm257_vm6 = vcmp.eq.s32.totalorder %v690_v3, 23  ;;  %vm270_vm7 = vcmp.eq.s32.totalorder %v673_v60, 25  ;;  %v248_v47 = vsel %vm243_vm2, %v651_v53, %v241_v45  ;;  %v261_v48 = vsel %vm256_vm3, %v659_v55, %v254_v46 }
  0x52   :  { %vm264_vm8 = vcmp.eq.s32.totalorder %v690_v3, 24  ;;  %vm277_vm9 = vcmp.eq.s32.totalorder %v673_v60, 26  ;;  %v255_v49 = vsel %vm250_vm4, %v655_v54, %v248_v47  ;;  %v268_v50 = vsel %vm263_vm5, %v666_v57, %v261_v48 }
  0x53   :  { %vm271_vm10 = vcmp.eq.s32.totalorder %v690_v3, 25  ;;  %vm284_vm11 = vcmp.eq.s32.totalorder %v673_v60, 27  ;;  %v262_v51 = vsel %vm257_vm6, %v659_v55, %v255_v49  ;;  %v275_v52 = vsel %vm270_vm7, %v670_v58, %v268_v50 }
  0x54   :  { %vm278_vm12 = vcmp.eq.s32.totalorder %v690_v3, 26  ;;  %vm291_vm13 = vcmp.eq.s32.totalorder %v673_v60, 28  ;;  %v269_v53 = vsel %vm264_vm8, %v666_v57, %v262_v51  ;;  %v282_v56 = vsel %vm277_vm9, %v677_v61, %v275_v52 }
  0x55   :  { %vm285_vm14 = vcmp.eq.s32.totalorder %v690_v3, 27  ;;  %vm298_vm15 = vcmp.eq.s32.totalorder %v673_v60, 29  ;;  %v276_v54 = vsel %vm271_vm10, %v670_v58, %v269_v53  ;;  %v289_v59 = vsel %vm284_vm11, %v679_v62, %v282_v56 }
  0x56   :  { %vm292_vm0 = vcmp.eq.s32.totalorder %v690_v3, 28  ;;  %vm305_vm1 = vcmp.eq.s32.totalorder %v673_v60, 30  ;;  %v283_v55 = vsel %vm278_vm12, %v677_v61, %v276_v54  ;;  %v296_v63 = vsel %vm291_vm13, %v684_v0, %v289_v59 }
  0x57   :  { %vm299_vm2 = vcmp.eq.s32.totalorder %v690_v3, 29  ;;  %vm312_vm3 = vcmp.eq.s32.totalorder %v673_v60, 31  ;;  %v290_v57 = vsel %vm285_vm14, %v679_v62, %v283_v55  ;;  %v303_v58 = vsel %vm298_vm15, %v686_v1, %v296_v63 }
  0x58   :  { %vm306_vm4 = vcmp.eq.s32.totalorder %v690_v3, 30  ;;  %vm319_vm5 = vcmask 130048   ;;  %v297_v4 = vsel %vm292_vm0, %v684_v0, %v290_v57  ;;  %v310_v6 = vsel %vm305_vm1, %v688_v2, %v303_v58 }
  0x59   :  { %vm313_vm6 = vcmp.eq.s32.totalorder %v690_v3, 31  ;;  %v304_v61 = vsel %vm299_vm2, %v686_v1, %v297_v4  ;;  %v317_v7 = vsel %vm312_vm3, %v699_v5, %v310_v6 }
  0x5a   :  { %v311_v60 = vsel %vm306_vm4, %v688_v2, %v304_v61  ;;  %320 = vst.msk [vmem:[#allocation5] sm:$0xff] %vm319_vm5, %v317_v7 }
  0x5b   :  { %v318_v62 = vsel %vm313_vm6, %v699_v5, %v311_v60 }
  0x5c   :  { %321 = vst.msk [vmem:[#allocation5 + $0x8] sm:$0xff] %vm319_vm5, %v318_v62 }
  0x5d   :  { %408 = shalt.err (!%p405_p7)
}
  0x5e   :  { %s880_s1 = sld [smem:[#allocation15_spill]] }
  0x64   :  { %s409_s16 = scalar_lea.hbm %s880_s1, 256 }
  0x65   :  { %p410_p8 = scmp.ne.s32.totalorder %s880_s1, %s409_s16  ;;  %p413_p9 = scmp.lt.u32.totalorder %s409_s16, %s880_s1 }
  0x67   :  { %p415_p10 = pnand %p413_p9, %p410_p8 }
  0x69   :  { %418 = shalt.err (!%p415_p10)
}
  0x6a   :  { %s426_s22 = smov 128   ;;  %s427_s18 = smov 8  }
  0x6b   :  { %333 = dma.vmem_to_hbm [thread:$0]  %s328_s29, 256, %s880_s1, [#allocation3], %s426_s22, %s426_s22, %s427_s18  }
  0x6c   :  { %421 = dma.done.wait [#allocation3], 256  }
  0x6d   :  { %422 = vsyncadd [#allocation3], 4294967040 }
  0x6e   :  { %337 = vsyncpa [#allocation3], 1 }
  0x6f   :  { %338 = vsyncpa [#allocation4], 1 }

</bundles_post_ra>
